<compile_context>
chip_gen: v6e
topology: v6e:2x2x1
jax: 0.10.0
libtpu: 0.0.40
codegen_flags: <defaults>
</compile_context>

<pallas_src>
import math

import jax
import jax.numpy as jnp
from jax.experimental import pallas as pl
from jax.experimental.pallas import tpu as pltpu


_VMEM_LIMIT = 32 * 1024 * 1024
_RHO_PAD = math.log(math.e - 1.0)      # softplus(_RHO_PAD) == 1  => KL_pad == 0


def _round_up(x, m):
    return (x + m - 1) // m * m


def _pick_tile(padded, candidates):
    """Largest candidate tile that divides `padded` (or `padded` itself if small)."""
    if padded <= candidates[0]:
        return padded
    for c in candidates:
        if padded % c == 0:
            return c
    return candidates[-1]


# ---------------------------------------------------------------------------
# Fused kernel (n_b == 1): rsample + KL + matmul, single pass over mu/rho/eps.
#   grid = (n_o, n_k); the output block (B_p, tn) is resident across k.
# ---------------------------------------------------------------------------
def _fused_linear_kernel(x_ref, mu_ref, rho_ref, eps_ref, o_ref, kl_ref):
    mu = mu_ref[...]
    rho = rho_ref[...]
    sigma = jax.nn.softplus(rho)                               # EUP exp + VPU
    w = (mu + sigma * eps_ref[...]).astype(jnp.bfloat16)       # rsample, bf16 for MXU

    @pl.when(pl.program_id(1) == 0)
    def _():
        o_ref[...] = jnp.zeros_like(o_ref)

    # out(B, tn) += x(B, tk) @ W(tn, tk)^T  -- contract dim 1 with dim 1 (no XLU transpose).
    o_ref[...] += jax.lax.dot_general(
        x_ref[...].astype(jnp.bfloat16), w,
        dimension_numbers=(((1,), (1,)), ((), ())),
        preferred_element_type=jnp.float32)

    # KL(q || N(0,1)) partial for this (tn, tk) tile, f32 math.
    # Stable log(sigma): for very negative rho, softplus(rho) ~ exp(rho) => log ~ rho.
    log_sigma = jnp.where(rho < -25.0, rho, jnp.log(sigma))
    kl_ref[0, 0] = jnp.sum(0.5 * (sigma * sigma + mu * mu - 1.0) - log_sigma)


# ---------------------------------------------------------------------------
# Fallback Kernel A (large batch): single pass over posterior params -> bf16 W
# plus per-tile KL partials in SMEM.
# ---------------------------------------------------------------------------
def _rsample_kl_kernel(mu_ref, rho_ref, eps_ref, w_ref, kl_ref):
    mu = mu_ref[...]
    rho = rho_ref[...]
    sigma = jax.nn.softplus(rho)
    w_ref[...] = (mu + sigma * eps_ref[...]).astype(w_ref.dtype)   # bf16 store

    log_sigma = jnp.where(rho < -25.0, rho, jnp.log(sigma))
    kl_ref[0, 0] = jnp.sum(0.5 * (sigma * sigma + mu * mu - 1.0) - log_sigma)


# ---------------------------------------------------------------------------
# Fallback Kernel B: tiled matmul out = x @ W.T, bf16 operands, f32 accumulation
# directly into the resident output block (no VMEM scratch).
# ---------------------------------------------------------------------------
def _matmul_kernel(x_ref, w_ref, o_ref):
    @pl.when(pl.program_id(2) == 0)
    def _():
        o_ref[...] = jnp.zeros_like(o_ref)

    o_ref[...] += jax.lax.dot_general(
        x_ref[...].astype(jnp.bfloat16), w_ref[...],
        dimension_numbers=(((1,), (1,)), ((), ())),
        preferred_element_type=jnp.float32)


def bayes_linear(x, mu, rho, eps):
    """Returns (output, elbo) matching the PyTorch module's forward (no bias)."""
    B, in_f = x.shape
    out_f, in_f2 = mu.shape
    assert in_f == in_f2

    # ---- lane-dense, MXU-aligned padded shapes + tile sizes -----------------
    B_p = _round_up(B, 8)
    out_p = _round_up(out_f, 128)
    in_p = _round_up(in_f, 128)

    tn = _pick_tile(out_p, (512, 256, 128))
    tk = _pick_tile(in_p, (512, 256, 128))
    n_o, n_k = out_p // tn, in_p // tk

    # ---- pad only when needed (aligned shapes pass straight through) --------
    if (B_p, in_p) != (B, in_f):
        x_p = jnp.zeros((B_p, in_p), jnp.float32).at[:B, :in_f].set(x)
    else:
        x_p = x
    if (out_p, in_p) != (out_f, in_f):
        mu_p = jnp.zeros((out_p, in_p), jnp.float32).at[:out_f, :in_f].set(mu)
        eps_p = jnp.zeros((out_p, in_p), jnp.float32).at[:out_f, :in_f].set(eps)
        rho_p = jnp.full((out_p, in_p), _RHO_PAD, jnp.float32).at[:out_f, :in_f].set(rho)
    else:
        mu_p, eps_p, rho_p = mu, eps, rho

    w_spec = pl.BlockSpec((tn, tk), lambda j, k: (j, k))
    kl_spec = pl.BlockSpec((1, 1), lambda j, k: (j, k),
                           memory_space=pltpu.MemorySpace.SMEM)

    if B_p <= 512:
        # ---- fused path: W never hits HBM ------------------------------------
        out_padded, kl_parts = pl.pallas_call(
            _fused_linear_kernel,
            out_shape=(
                jax.ShapeDtypeStruct((B_p, out_p), jnp.float32),
                jax.ShapeDtypeStruct((n_o, n_k), jnp.float32),
            ),
            grid=(n_o, n_k),
            in_specs=[
                pl.BlockSpec((B_p, tk), lambda j, k: (0, k)),
                w_spec, w_spec, w_spec,
            ],
            out_specs=(
                pl.BlockSpec((B_p, tn), lambda j, k: (0, j)),
                kl_spec,
            ),
            compiler_params=pltpu.CompilerParams(
                dimension_semantics=("parallel", "arbitrary"),
                vmem_limit_bytes=_VMEM_LIMIT),
        )(x_p, mu_p, rho_p, eps_p)
    else:
        # ---- large-batch fallback: bf16 W materialized once ------------------
        tm = _pick_tile(B_p, (256, 128, 64, 32, 16, 8))
        n_b = B_p // tm

        w_bf16, kl_parts = pl.pallas_call(
            _rsample_kl_kernel,
            out_shape=(
                jax.ShapeDtypeStruct((out_p, in_p), jnp.bfloat16),
                jax.ShapeDtypeStruct((n_o, n_k), jnp.float32),
            ),
            grid=(n_o, n_k),
            in_specs=[w_spec, w_spec, w_spec],
            out_specs=(w_spec, kl_spec),
            compiler_params=pltpu.CompilerParams(
                dimension_semantics=("parallel", "parallel"),
                vmem_limit_bytes=_VMEM_LIMIT),
        )(mu_p, rho_p, eps_p)

        out_padded = pl.pallas_call(
            _matmul_kernel,
            out_shape=jax.ShapeDtypeStruct((B_p, out_p), jnp.float32),
            grid=(n_b, n_o, n_k),
            in_specs=[
                pl.BlockSpec((tm, tk), lambda i, j, k: (i, k)),
                pl.BlockSpec((tn, tk), lambda i, j, k: (j, k)),
            ],
            out_specs=pl.BlockSpec((tm, tn), lambda i, j, k: (i, j)),
            compiler_params=pltpu.CompilerParams(
                dimension_semantics=("parallel", "parallel", "arbitrary"),
                vmem_limit_bytes=_VMEM_LIMIT),
        )(x_p, w_bf16)

    elbo = jnp.sum(kl_parts)
    out = out_padded if (B_p, out_p) == (B, out_f) else out_padded[:B, :out_f]
    return out, elbo


if __name__ == "__main__":
    key = jax.random.PRNGKey(0)
    k_x, k_mu, k_rho, k_eps, k2 = jax.random.split(key, 5)

    # ---- test 1: small, unaligned shapes -> fused path with padding ---------
    batch, in_feature, out_feature = 8, 32, 16

    x = jax.random.normal(k_x, (batch, in_feature), dtype=jnp.float32)
    # Deterministic synthetic posterior parameters (no checkpoint load).
    mu = 0.1 * jax.random.normal(k_mu, (out_feature, in_feature), dtype=jnp.float32)
    rho = -3.0 + 0.1 * jax.random.normal(k_rho, (out_feature, in_feature), dtype=jnp.float32)
    # rsample noise (the stochastic part of the reparameterization trick).
    eps = jax.random.normal(k_eps, (out_feature, in_feature), dtype=jnp.float32)

    out, elbo = bayes_linear(x, mu, rho, eps)
    jax.block_until_ready((out, elbo))

    sigma = jax.nn.softplus(rho)
    w = mu + sigma * eps
    out_ref = x @ w.T
    elbo_ref = jnp.sum(0.5 * (sigma ** 2 + mu ** 2 - 1.0) - jnp.log(sigma))
    assert out.shape == (batch, out_feature)
    # bf16 MXU operands => looser output tolerance; KL math stays f32.
    assert jnp.allclose(out, out_ref, atol=3e-2, rtol=3e-2)
    assert jnp.allclose(elbo, elbo_ref, atol=1e-2, rtol=1e-4)

    # ---- test 2: aligned shapes, large batch -> fallback path, no padding ---
    ka, kb, kc, kd = jax.random.split(k2, 4)
    b2, in2, out2 = 1024, 256, 384
    x2 = jax.random.normal(ka, (b2, in2), dtype=jnp.float32)
    mu2 = 0.1 * jax.random.normal(kb, (out2, in2), dtype=jnp.float32)
    rho2 = -3.0 + 0.1 * jax.random.normal(kc, (out2, in2), dtype=jnp.float32)
    eps2 = jax.random.normal(kd, (out2, in2), dtype=jnp.float32)

    o2, e2 = bayes_linear(x2, mu2, rho2, eps2)
    jax.block_until_ready((o2, e2))

    sigma2 = jax.nn.softplus(rho2)
    w2 = mu2 + sigma2 * eps2
    o2_ref = jnp.dot(x2.astype(jnp.bfloat16), w2.astype(jnp.bfloat16).T,
                     preferred_element_type=jnp.float32)   # bf16-MXU reference
    e2_ref = jnp.sum(0.5 * (sigma2 ** 2 + mu2 ** 2 - 1.0) - jnp.log(sigma2))
    assert o2.shape == (b2, out2)
    assert jnp.allclose(o2, o2_ref, atol=1e-2, rtol=1e-2)
    assert jnp.allclose(e2, e2_ref, atol=1e-1, rtol=1e-4)

    print("KERNEL_OK")
</pallas_src>

<mosaic_0001>
module attributes {stable_mosaic.version = 11 : i64} {
  func.func @_fused_linear_kernel(%arg0: i32, %arg1: i32, %arg2: memref<8x128xf32, #tpu.memory_space<vmem>>, %arg3: memref<128x128xf32, #tpu.memory_space<vmem>>, %arg4: memref<128x128xf32, #tpu.memory_space<vmem>>, %arg5: memref<128x128xf32, #tpu.memory_space<vmem>>, %arg6: memref<8x128xf32, #tpu.memory_space<vmem>>, %arg7: memref<1x1xf32, #tpu.memory_space<smem>>) attributes {dimension_semantics = [#tpu.dimension_semantics<parallel>, #tpu.dimension_semantics<arbitrary>], iteration_bounds = array<i64: 1, 1>, scalar_prefetch = 0 : i64, scratch_operands = 0 : i64, tpu.core_type = #tpu.core_type<tc>, window_params = [{transform_indices = @transform_0, window_bounds = array<i64: 8, 128>}, {transform_indices = @transform_1, window_bounds = array<i64: 128, 128>}, {transform_indices = @transform_2, window_bounds = array<i64: 128, 128>}, {transform_indices = @transform_3, window_bounds = array<i64: 128, 128>}, {transform_indices = @transform_4, window_bounds = array<i64: 8, 128>}, {transform_indices = @transform_5, window_bounds = array<i64: 1, 1>}]} {
    %c0 = arith.constant 0 : index
    %c0_0 = arith.constant 0 : index
    %0 = vector.load %arg3[%c0, %c0_0] : memref<128x128xf32, #tpu.memory_space<vmem>>, vector<128x128xf32>
    %c0_1 = arith.constant 0 : index
    %c0_2 = arith.constant 0 : index
    %1 = vector.load %arg4[%c0_1, %c0_2] : memref<128x128xf32, #tpu.memory_space<vmem>>, vector<128x128xf32>
    %cst = arith.constant 0.000000e+00 : f32
    %2 = vector.broadcast %cst : f32 to vector<128x128xf32>
    %3 = arith.maximumf %1, %2 : vector<128x128xf32>
    %4 = vector.broadcast %cst : f32 to vector<128x128xf32>
    %5 = arith.subf %1, %4 : vector<128x128xf32>
    %6 = arith.cmpf one, %5, %5 : vector<128x128xf32>
    %7 = vector.broadcast %cst : f32 to vector<128x128xf32>
    %8 = arith.addf %1, %7 : vector<128x128xf32>
    %9 = math.absf %5 : vector<128x128xf32>
    %cst_3 = arith.constant 0.000000e+00 : f32
    %10 = vector.broadcast %cst_3 : f32 to vector<128x128xf32>
    %11 = arith.subf %10, %9 : vector<128x128xf32>
    %12 = math.exp %11 : vector<128x128xf32>
    %13 = math.log1p %12 : vector<128x128xf32>
    %14 = arith.addf %3, %13 : vector<128x128xf32>
    %15 = arith.select %6, %8, %14 : vector<128x128xi1>, vector<128x128xf32>
    %c0_4 = arith.constant 0 : index
    %c0_5 = arith.constant 0 : index
    %16 = vector.load %arg5[%c0_4, %c0_5] : memref<128x128xf32, #tpu.memory_space<vmem>>, vector<128x128xf32>
    %17 = arith.mulf %15, %16 : vector<128x128xf32>
    %18 = arith.addf %0, %17 : vector<128x128xf32>
    %19 = arith.truncf %18 : vector<128x128xf32> to vector<128x128xbf16>
    %c0_i32 = arith.constant 0 : i32
    %20 = arith.cmpi eq, %arg1, %c0_i32 : i32
    %21 = arith.extui %20 : i1 to i32
    %c0_i32_6 = arith.constant 0 : i32
    %22 = arith.cmpi ne, %21, %c0_i32_6 : i32
    scf.if %22 {
      %cst_20 = arith.constant 0.000000e+00 : f32
      %46 = vector.broadcast %cst_20 : f32 to vector<8x128xf32>
      %c0_21 = arith.constant 0 : index
      %c0_22 = arith.constant 0 : index
      %47 = vector.load %arg6[%c0_21, %c0_22] : memref<8x128xf32, #tpu.memory_space<vmem>>, vector<8x128xf32>
      tpu.vector_store %arg6[%c0_21, %c0_22], %46 {strides = array<i32>} : memref<8x128xf32, #tpu.memory_space<vmem>>, vector<8x128xf32>,
    } else {
    }
    %c0_7 = arith.constant 0 : index
    %c0_8 = arith.constant 0 : index
    %23 = vector.load %arg6[%c0_7, %c0_8] : memref<8x128xf32, #tpu.memory_space<vmem>>, vector<8x128xf32>
    %c0_9 = arith.constant 0 : index
    %c0_10 = arith.constant 0 : index
    %24 = vector.load %arg2[%c0_9, %c0_10] : memref<8x128xf32, #tpu.memory_space<vmem>>, vector<8x128xf32>
    %25 = arith.truncf %24 : vector<8x128xf32> to vector<8x128xbf16>
    %cst_11 = arith.constant dense<0.000000e+00> : vector<8x128xf32>
    %26 = tpu.matmul %25, %19, %cst_11 {dimension_numbers = #tpu.dot_dimension_numbers<[1], [1], [0], [0], [0, 0, 1, 0], [], []>} : vector<8x128xbf16>, vector<128x128xbf16>, vector<8x128xf32> -> vector<8x128xf32>
    %27 = arith.addf %23, %26 : vector<8x128xf32>
    %c0_12 = arith.constant 0 : index
    %c0_13 = arith.constant 0 : index
    %28 = vector.load %arg6[%c0_12, %c0_13] : memref<8x128xf32, #tpu.memory_space<vmem>>, vector<8x128xf32>
    tpu.vector_store %arg6[%c0_12, %c0_13], %27 {strides = array<i32>} : memref<8x128xf32, #tpu.memory_space<vmem>>, vector<8x128xf32>,
    %cst_14 = arith.constant -2.500000e+01 : f32
    %29 = vector.broadcast %cst_14 : f32 to vector<128x128xf32>
    %30 = arith.cmpf olt, %1, %29 : vector<128x128xf32>
    %31 = math.log %15 : vector<128x128xf32>
    %32 = arith.select %30, %1, %31 : vector<128x128xi1>, vector<128x128xf32>
    %33 = arith.mulf %15, %15 : vector<128x128xf32>
    %34 = arith.mulf %0, %0 : vector<128x128xf32>
    %35 = arith.addf %33, %34 : vector<128x128xf32>
    %cst_15 = arith.constant 1.000000e+00 : f32
    %36 = vector.broadcast %cst_15 : f32 to vector<128x128xf32>
    %37 = arith.subf %35, %36 : vector<128x128xf32>
    %cst_16 = arith.constant 5.000000e-01 : f32
    %38 = vector.broadcast %cst_16 : f32 to vector<128x128xf32>
    %39 = arith.mulf %38, %37 : vector<128x128xf32>
    %40 = arith.subf %39, %32 : vector<128x128xf32>
    %41 = vector.shape_cast %40 : vector<128x128xf32> to vector<1x128x128xf32>
    %cst_17 = arith.constant dense<0.000000e+00> : vector<1xf32>
    %42 = vector.multi_reduction <add>, %41, %cst_17 [1, 2] : vector<1x128x128xf32> to vector<1xf32>
    %43 = vector.shape_cast %42 : vector<1xf32> to vector<1x1x1xf32>
    %44 = vector.extract %43[0, 0, 0] : f32 from vector<1x1x1xf32>
    %c0_18 = arith.constant 0 : index
    %c0_19 = arith.constant 0 : index
    %45 = memref.load %arg7[%c0_18, %c0_19] : memref<1x1xf32, #tpu.memory_space<smem>>
    memref.store %44, %arg7[%c0_18, %c0_19] : memref<1x1xf32, #tpu.memory_space<smem>>
    return
  }
  func.func @transform_0(%arg0: i32, %arg1: i32) -> (i32, i32) {
    %c0_i32 = arith.constant 0 : i32
    %c0_i32_0 = arith.constant 0 : i32
    return %c0_i32, %arg1 : i32, i32
  }
  func.func @transform_1(%arg0: i32, %arg1: i32) -> (i32, i32) {
    %c0_i32 = arith.constant 0 : i32
    return %arg0, %arg1 : i32, i32
  }
  func.func @transform_2(%arg0: i32, %arg1: i32) -> (i32, i32) {
    %c0_i32 = arith.constant 0 : i32
    return %arg0, %arg1 : i32, i32
  }
  func.func @transform_3(%arg0: i32, %arg1: i32) -> (i32, i32) {
    %c0_i32 = arith.constant 0 : i32
    return %arg0, %arg1 : i32, i32
  }
  func.func @transform_4(%arg0: i32, %arg1: i32) -> (i32, i32) {
    %c0_i32 = arith.constant 0 : i32
    %c0_i32_0 = arith.constant 0 : i32
    return %c0_i32, %arg0 : i32, i32
  }
  func.func @transform_5(%arg0: i32, %arg1: i32) -> (i32, i32) {
    %c0_i32 = arith.constant 0 : i32
    return %arg0, %arg1 : i32, i32
  }
}

</mosaic_0001>

<bundles_post_ra>
// kernel: tpu_custom_call.1
= control target key start
LH: loop header
LB: loop body
LE: loop exit
PB: predicated region body
PF: predicated region fallthrough
CT: control target
= control target key end

     0   :  { %11 = vsyncpa [#allocation3], 0  ;;  %s1649_s0 = inlined_call_operand.hbm [shape: f32[8,128], index: 0, kind: input, shape index: {}]   ;;  %s1650_s1 = inlined_call_operand.hbm [shape: f32[128,128], index: 1, kind: input, shape index: {}]   ;;  %s1651_s2 = inlined_call_operand.hbm [shape: f32[128,128], index: 2, kind: input, shape index: {}]   ;;  %s1652_s3 = inlined_call_operand.hbm [shape: f32[128,128], index: 3, kind: input, shape index: {}]   ;;  %s1653_s4 = inlined_call_operand.hbm [shape: f32[8,128], index: 4, kind: output, shape index: {0}]   ;;  %s1654_s5 = inlined_call_operand.hbm [shape: f32[1,1], index: 5, kind: output, shape index: {1}]  }
   0x1   :  { %12 = vsyncpa [#allocation7], 0 }
   0x2   :  { %13 = vsyncpa [#allocation10], 0 }
   0x3   :  { %14 = vsyncpa [#allocation4], 0 }
   0x4   :  { %15 = vsyncpa [#allocation5], 0  ;;  %s990_s18 = smov [#allocation6]  }
   0x5   :  { %s31_s19 = sshll.u32 %s990_s18, 4  ;;  %s32_s19 = int_to_ptr.vmem [resolvable:$true] %s31_s19 }
   0x6   :  { %s880_s20 = scalar_lea.vmem %s32_s19, 2048  ;;  %p885_p1 = scmp.lt.s32.totalorder %s32_s19, %s32_s19 }
   0x7   :  { %p881_p0 = scmp.ne.s32.totalorder %s32_s19, %s880_s20  ;;  %p886_p2 = scmp.lt.s32.totalorder %s880_s20, %s880_s20 }
   0x9   :  { %p887_p3 = por %p886_p2, %p885_p1 }
   0xb   :  { %p888_p4 = pnand %p887_p3, %p881_p0 }
   0xd   :  { %891 = shalt.err (!%p888_p4)
}
   0xe   :  { %s991_s21 = smov 128   ;;  %s992_s22 = smov 8  }
   0xf   :  { %37 = dma.hbm_to_vmem [thread:$0]  %s1650_s1, 2048, %s32_s19, [#allocation7], %s991_s21, %s991_s21, %s992_s22  }
  0x10   :  { %s993_s25 = smov [#allocation2]   ;;  %s994_s27 = smov [#allocation8]  }
  0x11   :  { %s22_s26 = sshll.u32 %s993_s25, 4  ;;  %s43_s28 = sshll.u32 %s994_s27, 4  ;;  %s23_s26 = int_to_ptr.vmem [resolvable:$true] %s22_s26  ;;  %s44_s28 = int_to_ptr.vmem [resolvable:$true] %s43_s28 }
  0x12   :  { %s900_s29 = scalar_lea.vmem %s23_s26, 128  ;;  %p905_p6 = scmp.lt.s32.totalorder %s23_s26, %s23_s26 }
  0x13   :  { %p901_p5 = scmp.ne.s32.totalorder %s23_s26, %s900_s29  ;;  %p906_p7 = scmp.lt.s32.totalorder %s900_s29, %s900_s29 }
  0x15   :  { %p907_p8 = por %p906_p7, %p905_p6 }
  0x17   :  { %p908_p9 = pnand %p907_p8, %p901_p5 }
  0x19   :  { %911 = shalt.err (!%p908_p9)
}
  0x1a   :  { %25 = dma.hbm_to_vmem [thread:$0]  %s1649_s0, 128, %s23_s26, [#allocation3]  }
  0x1b   :  { %s920_s7 = scalar_lea.vmem %s44_s28, 2048  ;;  %p925_p11 = scmp.lt.s32.totalorder %s44_s28, %s44_s28 }
  0x1c   :  { %p921_p10 = scmp.ne.s32.totalorder %s44_s28, %s920_s7  ;;  %p926_p12 = scmp.lt.s32.totalorder %s920_s7, %s920_s7 }
  0x1e   :  { %p927_p13 = por %p926_p12, %p925_p11 }
  0x20   :  { %p928_p0 = pnand %p927_p13, %p921_p10 }
  0x22   :  { %931 = shalt.err (!%p928_p0)
}
  0x23   :  { %49 = dma.hbm_to_vmem [thread:$0]  %s1651_s2, 2048, %s44_s28, [#allocation7], %s991_s21, %s991_s21, %s992_s22  }
  0x24   :  { %s995_s9 = smov [#allocation9]  }
  0x25   :  { %s55_s10 = sshll.u32 %s995_s9, 4  ;;  %s56_s10 = int_to_ptr.vmem [resolvable:$true] %s55_s10 }
  0x26   :  { %s940_s11 = scalar_lea.vmem %s56_s10, 2048  ;;  %p945_p2 = scmp.lt.s32.totalorder %s56_s10, %s56_s10 }
  0x27   :  { %p941_p1 = scmp.ne.s32.totalorder %s56_s10, %s940_s11  ;;  %p946_p3 = scmp.lt.s32.totalorder %s940_s11, %s940_s11 }
  0x29   :  { %p947_p4 = por %p946_p3, %p945_p2 }
  0x2b   :  { %p948_p5 = pnand %p947_p4, %p941_p1 }
  0x2d   :  { %951 = shalt.err (!%p948_p5)
}
  0x2e   :  { %61 = dma.hbm_to_vmem [thread:$0]  %s1652_s3, 2048, %s56_s10, [#allocation10], %s991_s21, %s991_s21, %s992_s22  }
  0x2f   :  { %980 = dma.done.wait [#allocation3], 128  }
  0x30   :  { %981 = vsyncadd [#allocation3], 4294967168 }
  0x31   :  { %982 = dma.done.wait [#allocation7], 4096  }
  0x32   :  { %983 = vsyncadd [#allocation7], 4294963200 }
  0x33   :  { %984 = dma.done.wait [#allocation10], 2048  }
  0x34   :  { %985 = vsyncadd [#allocation10], 4294965248  ;;  %v996_v0 = vmov 0.0   ;;  %v1052_v1 = vld [vmem:[#allocation8 + $0x70] sm:$0xff]  ;;  %v1054_v2 = vld [vmem:[#allocation8 + $0x78] sm:$0xff]  ;;  %s998_s2 = smov [#allocation11]  }
  0x35   :  { %742 = vmatprep.subr.bf16.mxu0 %v996_v0  ;;  %v169_v3 = vand.u32 2147483647, %v1052_v1  ;;  %v170_v4 = vand.u32 2147483647, %v1054_v2  ;;  %v1058_v5 = vld [vmem:[#allocation8 + $0x60] sm:$0xff]  ;;  %v1060_v7 = vld [vmem:[#allocation8 + $0x68] sm:$0xff]  ;;  %vm137_vm2 = vcmp.ne.f32.partialorder %v1052_v1, %v1052_v1  ;;  %vm138_vm4 = vcmp.ne.f32.partialorder %v1054_v2, %v1054_v2 }
  0x36   :  { %v167_v8 = vand.u32 2147483647, %v1058_v5  ;;  %v168_v10 = vand.u32 2147483647, %v1060_v7  ;;  %v1064_v13 = vld [vmem:[#allocation8 + $0x50] sm:$0xff]  ;;  %v1066_v14 = vld [vmem:[#allocation8 + $0x58] sm:$0xff]  ;;  %vm135_vm5 = vcmp.ne.f32.partialorder %v1058_v5, %v1058_v5  ;;  %vm136_vm6 = vcmp.ne.f32.partialorder %v1060_v7, %v1060_v7 }
  0x37   :  { %v185_v6 = vsub.f32 0.0, %v169_v3  ;;  %v186_v9 = vsub.f32 0.0, %v170_v4  ;;  %v165_v19 = vand.u32 2147483647, %v1064_v13  ;;  %v166_v20 = vand.u32 2147483647, %v1066_v14 }
  0x38   :  { %v183_v12 = vsub.f32 0.0, %v167_v8  ;;  %v184_v16 = vsub.f32 0.0, %v168_v10  ;;  %v1070_v21 = vld [vmem:[#allocation8 + $0x40] sm:$0xff]  ;;  %v1072_v22 = vld [vmem:[#allocation8 + $0x48] sm:$0xff]  ;;  %v1075_v26 = vld [vmem:[#allocation8 + $0x30] sm:$0xff]  ;;  %v121_v41 = vmax.f32 %v1052_v1, 0.0  ;;  %vm133_vm11 = vcmp.ne.f32.partialorder %v1064_v13, %v1064_v13 }
  0x39   :  { %v215_v11 = vmul.f32 1.442695, %v185_v6  ;;  %v217_v15 = vmul.f32 1.442695, %v186_v9  ;;  %v181_v23 = vsub.f32 0.0, %v165_v19  ;;  %v182_v24 = vsub.f32 0.0, %v166_v20 }
  0x3a   :  { %v211_v17 = vmul.f32 1.442695, %v183_v12  ;;  %v213_v18 = vmul.f32 1.442695, %v184_v16  ;;  %v163_v25 = vand.u32 2147483647, %v1070_v21  ;;  %vm134_vm12 = vcmp.ne.f32.partialorder %v1066_v14, %v1066_v14 }
  0x3b   :  { %774 = vpow2.f32 %v215_v11  ;;  %v207_v27 = vmul.f32 1.442695, %v181_v23  ;;  %v209_v28 = vmul.f32 1.442695, %v182_v24  ;;  %v164_v29 = vand.u32 2147483647, %v1072_v22 }
  0x3c   :  { %776 = vpow2.f32 %v217_v15  ;;  %v179_v30 = vsub.f32 0.0, %v163_v25  ;;  %v1078_v31 = vld [vmem:[#allocation8 + $0x38] sm:$0xff]  ;;  %v161_v34 = vand.u32 2147483647, %v1075_v26  ;;  %v122_v42 = vmax.f32 %v1054_v2, 0.0  ;;  %v1084_v46 = vld [vmem:[#allocation6 + $0x60] sm:$0xff] }
  0x3d   :  { %778 = vpow2.f32 %v211_v17  ;;  %v180_v32 = vsub.f32 0.0, %v164_v29  ;;  %v162_v36 = vand.u32 2147483647, %v1078_v31  ;;  %v119_v47 = vmax.f32 %v1058_v5, 0.0  ;;  %v1097_v56 = vld [vmem:[#allocation6 + $0x50] sm:$0xff]  ;;  %v1099_v57 = vld [vmem:[#allocation6 + $0x58] sm:$0xff] }
  0x3e   :  { %780 = vpow2.f32 %v213_v18  ;;  %v203_v33 = vmul.f32 1.442695, %v179_v30  ;;  %v177_v37 = vsub.f32 0.0, %v161_v34  ;;  %v120_v48 = vmax.f32 %v1060_v7, 0.0  ;;  %v1111_v62 = vld [vmem:[#allocation6 + $0x40] sm:$0xff]  ;;  %v1116_v8 = vld [vmem:[#allocation8 + $0x28] sm:$0xff] }
  0x3f   :  { %782 = vpow2.f32 %v207_v27  ;;  %v205_v35 = vmul.f32 1.442695, %v180_v32  ;;  %v178_v38 = vsub.f32 0.0, %v162_v36  ;;  %v1092_v52 = vmul.f32 %v1084_v46, %v1084_v46  ;;  %v1113_v63 = vld [vmem:[#allocation8 + $0x20] sm:$0xff]  ;;  %s693_s3 = sshll.u32 %s998_s2, 4  ;;  %s694_s3 = int_to_ptr.vmem [resolvable:$true] %s693_s3 }
  0x40   :  { %784 = vpow2.f32 %v209_v28  ;;  %v199_v39 = vmul.f32 1.442695, %v177_v37  ;;  %v117_v58 = vmax.f32 %v1064_v13, 0.0  ;;  %v118_v59 = vmax.f32 %v1066_v14, 0.0  ;;  %s952_s13 = scalar_lea.vmem %s694_s3, 128  ;;  %p957_p7 = scmp.lt.s32.totalorder %s694_s3, %s694_s3 }
  0x41   :  { %786 = vpow2.f32 %v203_v33  ;;  %v201_v43 = vmul.f32 1.442695, %v178_v38  ;;  %v1105_v60 = vmul.f32 %v1097_v56, %v1097_v56  ;;  %v1109_v61 = vmul.f32 %v1099_v57, %v1099_v57  ;;  %p953_p6 = scmp.ne.s32.totalorder %s694_s3, %s952_s13  ;;  %p958_p8 = scmp.lt.s32.totalorder %s952_s13, %s952_s13 }
  0x42   :  { %788 = vpow2.f32 %v205_v35  ;;  %v1122_v12 = vmul.f32 %v1111_v62, %v1111_v62  ;;  %v159_v24 = vand.u32 2147483647, %v1113_v63  ;;  %v160_v25 = vand.u32 2147483647, %v1116_v8 }
  0x43   :  { %790 = vpow2.f32 %v199_v39  ;;  %vm131_vm14 = vcmp.ne.f32.partialorder %v1070_v21, %v1070_v21  ;;  %vm132_vm15 = vcmp.ne.f32.partialorder %v1072_v22, %v1072_v22  ;;  %p959_p9 = por %p958_p8, %p957_p7 }
  0x44   :  { %792 = vpow2.f32 %v201_v43 }
  0x45   :  { %p960_p10 = pnand %p959_p9, %p953_p6 }
  0x48   :  { %v775_v40 = vpop.eup %774 }
  0x49   :  { %v777_v44 = vpop.eup %776  ;;  %v345_v45 = vadd.f32 1.0, %v775_v40  ;;  %v348_v50 = vmul.f32 -0.5, %v775_v40  ;;  %v351_v3 = vand.u32 2147483647, %v775_v40 }
  0x4a   :  { %v1088_v49 = vpop.eup %778  ;;  %v354_v51 = vadd.f32 1.0, %v777_v44  ;;  %v357_v54 = vmul.f32 -0.5, %v777_v44  ;;  %v360_v4 = vand.u32 2147483647, %v777_v44 }
  0x4b   :  { %v1094_v53 = vpop.eup %780  ;;  %794 = vlog2.f32 %v345_v45  ;;  %v327_v55 = vadd.f32 1.0, %v1088_v49  ;;  %v349_v9 = vadd.f32 1.0, %v348_v50  ;;  %v330_v10 = vmul.f32 -0.5, %v1088_v49 }
  0x4c   :  { %796 = vlog2.f32 %v354_v51  ;;  %v336_v6 = vadd.f32 1.0, %v1094_v53  ;;  %v783_v15 = vpop.eup %782  ;;  %v358_v16 = vadd.f32 1.0, %v357_v54  ;;  %v333_v17 = vand.u32 2147483647, %v1088_v49 }
  0x4d   :  { %798 = vlog2.f32 %v327_v55  ;;  %v785_v19 = vpop.eup %784  ;;  %v339_v20 = vmul.f32 -0.5, %v1094_v53  ;;  %v309_v23 = vadd.f32 1.0, %v783_v15  ;;  %vm1129_vm0 = vcmp.lt.f32.partialorder %v351_v3, 0.0004427343 }
  0x4e   :  { %800 = vlog2.f32 %v336_v6  ;;  %vm1133_vm1 = vcmp.lt.f32.partialorder %v360_v4, 0.0004427343  ;;  %v312_v29 = vmul.f32 -0.5, %v783_v15  ;;  %v318_v30 = vadd.f32 1.0, %v785_v19  ;;  %v1137_v32 = vpop.eup %786 }
  0x4f   :  { %v350_v33 = vmul.f32 %v775_v40, %v349_v9  ;;  %v331_v34 = vadd.f32 1.0, %v330_v10  ;;  %802 = vlog2.f32 %v309_v23  ;;  %v321_v35 = vmul.f32 -0.5, %v785_v19  ;;  %v1139_v36 = vpop.eup %788 }
  0x50   :  { %v359_v37 = vmul.f32 %v777_v44, %v358_v16  ;;  %vm1143_vm3 = vcmp.lt.f32.partialorder %v333_v17, 0.0004427343  ;;  %v342_v39 = vand.u32 2147483647, %v1094_v53  ;;  %804 = vlog2.f32 %v318_v30  ;;  %v1156_v3 = vpop.eup %790 }
  0x51   :  { %v340_v40 = vadd.f32 1.0, %v339_v20  ;;  %v291_v43 = vadd.f32 1.0, %v1137_v32  ;;  %v175_v45 = vsub.f32 0.0, %v159_v24  ;;  %v1151_v50 = vsub.f32 0.0, %v160_v25  ;;  %v1160_v10 = vpop.eup %792 }
  0x52   :  { %v313_v44 = vadd.f32 1.0, %v312_v29  ;;  %v315_v51 = vand.u32 2147483647, %v783_v15  ;;  %v324_v54 = vand.u32 2147483647, %v785_v19  ;;  %v300_v55 = vadd.f32 1.0, %v1139_v36 }
  0x53   :  { %v332_v4 = vmul.f32 %v1088_v49, %v331_v34  ;;  %v322_v6 = vadd.f32 1.0, %v321_v35  ;;  %806 = vlog2.f32 %v291_v43  ;;  %v294_v9 = vmul.f32 -0.5, %v1137_v32 }
  0x54   :  { %vm1164_vm7 = vcmp.lt.f32.partialorder %v342_v39, 0.0004427343  ;;  %v297_v17 = vand.u32 2147483647, %v1137_v32  ;;  %808 = vlog2.f32 %v300_v55  ;;  %v273_v20 = vadd.f32 1.0, %v1156_v3  ;;  %v406_v39 = vld [vmem:[#allocation9 + $0x58] sm:$0xff] }
  0x55   :  { %v341_v49 = vmul.f32 %v1094_v53, %v340_v40  ;;  %v303_v24 = vmul.f32 -0.5, %v1139_v36  ;;  %v282_v25 = vadd.f32 1.0, %v1160_v10  ;;  %v195_v29 = vmul.f32 1.442695, %v175_v45 }
  0x56   :  { %v1173_v35 = vmul.f32 %v783_v15, %v313_v44  ;;  %vm1175_vm8 = vcmp.lt.f32.partialorder %v315_v51, 0.0004427343  ;;  %vm1179_vm9 = vcmp.lt.f32.partialorder %v324_v54, 0.0004427343  ;;  %v323_v53 = vmul.f32 %v785_v19, %v322_v6  ;;  %v409_v19 = vld [vmem:[#allocation9 + $0x70] sm:$0xff]  ;;  %v410_v6 = vld [vmem:[#allocation9 + $0x78] sm:$0xff] }
  0x57   :  { %v295_v40 = vadd.f32 1.0, %v294_v9  ;;  %v306_v11 = vand.u32 2147483647, %v1139_v36  ;;  %vm1186_vm10 = vcmp.lt.f32.partialorder %v297_v17, 0.0004427343  ;;  %810 = vlog2.f32 %v273_v20  ;;  %v407_v20 = vld [vmem:[#allocation9 + $0x60] sm:$0xff] }
  0x58   :  { %v795_v23 = vpop.eup %794  ;;  %v304_v27 = vadd.f32 1.0, %v303_v24  ;;  %812 = vlog2.f32 %v282_v25  ;;  %v1218_v24 = vld [vmem:[#allocation6 + $0x78] sm:$0xff]  ;;  %v288_v43 = vand.u32 2147483647, %v1160_v10 }
  0x59   :  { %v797_v30 = vpop.eup %796  ;;  %v347_v34 = vmul.f32 0.6931472, %v795_v23  ;;  %vm1214_vm13 = vcmp.lt.f32.partialorder %v306_v11, 0.0004427343  ;;  %814 = vpow2.f32 %v195_v29 }
  0x5a   :  { %v799_v55 = vpop.eup %798  ;;  %v356_v18 = vmul.f32 0.6931472, %v797_v30 }
  0x5b   :  { %v353_v45 = vsel %vm1129_vm0, %v350_v33, %v347_v34  ;;  %v329_v23 = vmul.f32 0.6931472, %v799_v55  ;;  %v801_v44 = vpop.eup %800 }
  0x5c   :  { %v362_v51 = vsel %vm1133_vm1, %v359_v37, %v356_v18  ;;  %v377_v54 = vadd.f32 %v353_v45, %v121_v41  ;;  %v338_v18 = vmul.f32 0.6931472, %v801_v44  ;;  %v276_v37 = vmul.f32 -0.5, %v1156_v3  ;;  %v1203_v41 = vld [vmem:[#allocation6 + $0x70] sm:$0xff]  ;;  %v408_v45 = vld [vmem:[#allocation9 + $0x68] sm:$0xff] }
  0x5d   :  { %v378_v33 = vadd.f32 %v362_v51, %v122_v42  ;;  %v335_v28 = vsel %vm1143_vm3, %v332_v4, %v329_v23  ;;  %v296_v42 = vmul.f32 %v1137_v32, %v295_v40  ;;  %v803_v4 = vpop.eup %802  ;;  %v279_v32 = vand.u32 2147483647, %v1156_v3 }
  0x5e   :  { %v1209_v9 = vsel %vm137_vm2, %v1052_v1, %v377_v54  ;;  %v375_v17 = vadd.f32 %v335_v28, %v119_v47  ;;  %v344_v47 = vsel %vm1164_vm7, %v341_v49, %v338_v18  ;;  %v805_v11 = vpop.eup %804  ;;  %v311_v29 = vmul.f32 0.6931472, %v803_v4 }
  0x5f   :  { %v1224_v25 = vsel %vm138_vm4, %v1054_v2, %v378_v33  ;;  %v425_v30 = vmul.f32 %v409_v19, %v1209_v9  ;;  %v376_v55 = vadd.f32 %v344_v47, %v120_v48  ;;  %v305_v48 = vmul.f32 %v1139_v36, %v304_v27  ;;  %v1255_v33 = vld [vmem:[#allocation6 + $0x68] sm:$0xff] }
  0x60   :  { %v426_v34 = vmul.f32 %v410_v6, %v1224_v25  ;;  %v1237_v40 = vsel %vm135_vm5, %v1058_v5, %v375_v17  ;;  %v320_v54 = vmul.f32 0.6931472, %v805_v11  ;;  %v807_v19 = vpop.eup %806  ;;  %v285_v36 = vmul.f32 -0.5, %v1160_v10  ;;  %v405_v11 = vld [vmem:[#allocation9 + $0x50] sm:$0xff] }
  0x61   :  { %v441_v16 = vadd.f32 %v425_v30, %v1203_v41  ;;  %v423_v49 = vmul.f32 %v407_v20, %v1237_v40  ;;  %v577_v23 = vmul.f32 %v1237_v40, %v1237_v40  ;;  %v1253_v51 = vsel %vm136_vm6, %v1060_v7, %v376_v55  ;;  %v809_v18 = vpop.eup %808 }
  0x62   :  { %v442_v44 = vadd.f32 %v426_v34, %v1218_v24  ;;  %v424_v6 = vmul.f32 %v408_v45, %v1253_v51  ;;  %v197_v27 = vmul.f32 1.442695, %v1151_v50  ;;  %v317_v20 = vsel %vm1175_vm8, %v1173_v35, %v311_v29 }
  0x63   :  { %v1259_v28 = vadd.f32 %v1092_v52, %v577_v23  ;;  %v326_v4 = vsel %vm1179_vm9, %v323_v53, %v320_v54  ;;  %v293_v30 = vmul.f32 0.6931472, %v807_v19  ;;  %v373_v47 = vadd.f32 %v317_v20, %v117_v58 }
  0x64   :  { %v450_v17 = vpack.c.bf16 %v442_v44, %v441_v16  ;;  %v374_v52 = vadd.f32 %v326_v4, %v118_v59  ;;  %v302_v34 = vmul.f32 0.6931472, %v809_v18  ;;  %v277_v55 = vadd.f32 1.0, %v276_v37  ;;  %v84_v59 = vld [vmem:[#allocation6 + $0x48] sm:$0xff]  ;;  %v811_v15 = vpop.eup %810 }
  0x65   :  { %v439_v50 = vadd.f32 %v423_v49, %v1084_v46  ;;  %v440_v45 = vadd.f32 %v424_v6, %v1255_v33  ;;  %v299_v35 = vsel %vm1186_vm10, %v296_v42, %v293_v30  ;;  %v389_v58 = vsel %vm133_vm11, %v1064_v13, %v373_v47  ;;  %v813_v23 = vpop.eup %812  ;;  %v1361_v30 = vld [vmem:[#allocation8 + $0x8] sm:$0xff] }
  0x66   :  { %743 = vmatpush3.bf16.xpose.msra.mxu0 %v450_v17  ;;  %v1286_v46 = vsel %vm134_vm12, %v1066_v14, %v374_v52  ;;  %v308_v53 = vsel %vm1214_vm13, %v305_v48, %v302_v34  ;;  %816 = vpow2.f32 %v197_v27  ;;  %v421_v37 = vmul.f32 %v405_v11, %v389_v58  ;;  %v1322_v47 = vpop.eup %814 }
  0x67   :  { %744 = vmatprep.subr.bf16.mxu0 %v996_v0  ;;  %v575_v42 = vmul.f32 %v389_v58, %v389_v58  ;;  %v590_v16 = vmul.f32 %v84_v59, %v84_v59  ;;  %v286_v49 = vadd.f32 1.0, %v285_v36  ;;  %v422_v44 = vmul.f32 %v406_v39, %v1286_v46 }
  0x68   :  { %v576_v29 = vmul.f32 %v1286_v46, %v1286_v46  ;;  %v1671_v54 = vmax.f32 %v1070_v21, 0.0  ;;  %v1672_v6 = vmax.f32 %v1072_v22, 0.0  ;;  %v449_v38 = vpack.c.bf16 %v440_v45, %v439_v50  ;;  %v404_v45 = vld [vmem:[#allocation9 + $0x48] sm:$0xff] }
  0x69   :  { %v1298_v48 = vadd.f32 %v1105_v60, %v575_v42  ;;  %v278_v27 = vmul.f32 %v1156_v3, %v277_v55  ;;  %vm1301_vm0 = vcmp.lt.f32.partialorder %v279_v32, 0.0004427343  ;;  %v275_v4 = vmul.f32 0.6931472, %v811_v15  ;;  %v403_v55 = vld [vmem:[#allocation9 + $0x40] sm:$0xff] }
  0x6a   :  { %v371_v19 = vadd.f32 %v299_v35, %v1671_v54  ;;  %v372_v18 = vadd.f32 %v308_v53, %v1672_v6  ;;  %v1306_v17 = vadd.f32 %v1109_v61, %v576_v29  ;;  %vm1312_vm1 = vcmp.lt.f32.partialorder %v288_v43, 0.0004427343 }
  0x6b   :  { %v437_v60 = vadd.f32 %v421_v37, %v1097_v56  ;;  %v284_v32 = vmul.f32 0.6931472, %v813_v23  ;;  %v287_v61 = vmul.f32 %v1160_v10, %v286_v49  ;;  %v438_v52 = vadd.f32 %v422_v44, %v1099_v57  ;;  %v402_v23 = vld [vmem:[#allocation9 + $0x38] sm:$0xff] }
  0x6c   :  { %v387_v20 = vsel %vm131_vm14, %v1070_v21, %v371_v19  ;;  %v388_v3 = vsel %vm132_vm15, %v1072_v22, %v372_v18  ;;  %v113_v56 = vmax.f32 %v1075_v26, 0.0  ;;  %v114_v50 = vmax.f32 %v1078_v31, 0.0 }
  0x6d   :  { %818 = vlog2.f32 %v387_v20  ;;  %v573_v11 = vmul.f32 %v387_v20, %v387_v20  ;;  %v574_v34 = vmul.f32 %v388_v3, %v388_v3  ;;  %v281_v35 = vsel %vm1301_vm0, %v278_v27, %v275_v4  ;;  %v1359_v4 = vld [vmem:[#allocation8] sm:$0xff] }
  0x6e   :  { %745 = vmatpush3.bf16.xpose.msra.mxu0 %v449_v38  ;;  %820 = vlog2.f32 %v388_v3  ;;  %v290_v57 = vsel %vm1312_vm1, %v287_v61, %v284_v32  ;;  %v255_v43 = vadd.f32 1.0, %v1322_v47  ;;  %v448_v53 = vpack.c.bf16 %v438_v52, %v437_v60  ;;  %v1369_v52 = vld [vmem:[#allocation8 + $0x10] sm:$0xff] }
  0x6f   :  { %746 = vmatprep.subr.bf16.mxu0 %v996_v0  ;;  %v605_v39 = vadd.f32 %v1122_v12, %v573_v11  ;;  %v606_v10 = vadd.f32 %v590_v16, %v574_v34  ;;  %v419_v15 = vmul.f32 %v403_v55, %v387_v20  ;;  %v420_v37 = vmul.f32 %v404_v45, %v388_v3  ;;  %v401_v16 = vld [vmem:[#allocation9 + $0x30] sm:$0xff]  ;;  %v1371_v11 = vld [vmem:[#allocation8 + $0x18] sm:$0xff] }
  0x70   :  { %v369_v42 = vadd.f32 %v281_v35, %v113_v56  ;;  %v370_v49 = vadd.f32 %v290_v57, %v114_v50  ;;  %822 = vlog2.f32 %v255_v43  ;;  %vm129_vm2 = vcmp.ne.f32.partialorder %v1075_v26, %v1075_v26 }
  0x71   :  { %vm130_vm3 = vcmp.ne.f32.partialorder %v1078_v31, %v1078_v31  ;;  %824 = vlog2.f32 %v1209_v9  ;;  %v258_v44 = vmul.f32 -0.5, %v1322_v47  ;;  %v435_v29 = vadd.f32 %v419_v15, %v1111_v62 }
  0x72   :  { %826 = vlog2.f32 %v389_v58  ;;  %v436_v54 = vadd.f32 %v420_v37, %v84_v59  ;;  %v725_v19 = vadd.f32 -1.0, %v605_v39  ;;  %v1344_v6 = vsel %vm129_vm2, %v1075_v26, %v369_v42  ;;  %v1356_v59 = vld [vmem:[#allocation6 + $0x30] sm:$0xff] }
  0x73   :  { %v1338_v12 = vpop.eup %816  ;;  %v1347_v18 = vsel %vm130_vm3, %v1078_v31, %v370_v49  ;;  %v726_v38 = vadd.f32 -1.0, %v606_v10  ;;  %v417_v27 = vmul.f32 %v401_v16, %v1344_v6  ;;  %828 = vlog2.f32 %v1286_v46  ;;  %v1366_v46 = vld [vmem:[#allocation6 + $0x38] sm:$0xff] }
  0x74   :  { %v418_v36 = vmul.f32 %v402_v23, %v1347_v18  ;;  %v264_v58 = vadd.f32 1.0, %v1338_v12  ;;  %v259_v62 = vadd.f32 1.0, %v258_v44  ;;  %vm509_vm4 = vcmp.lt.f32.partialorder %v1070_v21, -25.0 }
  0x75   :  { %vm510_vm5 = vcmp.lt.f32.partialorder %v1072_v22, -25.0  ;;  %v111_v20 = vmax.f32 %v1113_v63, 0.0  ;;  %v447_v3 = vpack.c.bf16 %v436_v54, %v435_v29  ;;  %v1364_v32 = vmul.f32 0.5, %v725_v19 }
  0x76   :  { %747 = vmatpush3.bf16.xpose.msra.mxu0 %v448_v53  ;;  %830 = vlog2.f32 %v264_v58  ;;  %v261_v61 = vand.u32 2147483647, %v1322_v47  ;;  %v1373_v56 = vmul.f32 0.5, %v726_v38  ;;  %v433_v50 = vadd.f32 %v417_v27, %v1356_v59 }
  0x77   :  { %748 = vmatprep.subr.bf16.mxu0 %v996_v0  ;;  %832 = vlog2.f32 %v1224_v25  ;;  %v434_v45 = vadd.f32 %v418_v36, %v1366_v46  ;;  %v260_v10 = vmul.f32 %v1322_v47, %v259_v62  ;;  %v155_v35 = vand.u32 2147483647, %v1359_v4 }
  0x78   :  { %v156_v57 = vand.u32 2147483647, %v1361_v30  ;;  %v267_v53 = vmul.f32 -0.5, %v1338_v12  ;;  %v157_v15 = vand.u32 2147483647, %v1369_v52  ;;  %834 = vlog2.f32 %v1237_v40 }
  0x79   :  { %v158_v37 = vand.u32 2147483647, %v1371_v11  ;;  %v171_v49 = vsub.f32 0.0, %v155_v35  ;;  %vm1398_vm6 = vcmp.lt.f32.partialorder %v261_v61, 0.0004427343  ;;  %836 = vlog2.f32 %v1253_v51 }
  0x7a   :  { %v819_v60 = vpop.eup %818  ;;  %v172_v16 = vsub.f32 0.0, %v156_v57  ;;  %v173_v29 = vsub.f32 0.0, %v157_v15  ;;  %v268_v36 = vadd.f32 1.0, %v267_v53  ;;  %vm127_vm7 = vcmp.ne.f32.partialorder %v1113_v63, %v1113_v63 }
  0x7b   :  { %v821_v34 = vpop.eup %820  ;;  %v534_v55 = vmul.f32 0.6931472, %v819_v60  ;;  %v174_v54 = vsub.f32 0.0, %v158_v37  ;;  %v187_v19 = vmul.f32 1.442695, %v171_v49  ;;  %v727_v57 = vadd.f32 -1.0, %v1298_v48 }
  0x7c   :  { %v536_v39 = vmul.f32 0.6931472, %v821_v34  ;;  %v189_v38 = vmul.f32 1.442695, %v172_v16  ;;  %v191_v58 = vmul.f32 1.442695, %v173_v29  ;;  %vm128_vm9 = vcmp.ne.f32.partialorder %v1116_v8, %v1116_v8 }
  0x7d   :  { %v1383_v43 = vsel %vm509_vm4, %v1070_v21, %v534_v55  ;;  %v823_v23 = vpop.eup %822  ;;  %v193_v62 = vmul.f32 1.442695, %v174_v54  ;;  %v270_v34 = vand.u32 2147483647, %v1338_v12  ;;  %838 = vpow2.f32 %v187_v19  ;;  %v1435_v19 = vld [vmem:[#allocation6 + $0x20] sm:$0xff] }
  0x7e   :  { %749 = vmatpush3.bf16.xpose.msra.mxu0 %v447_v3  ;;  %v1391_v47 = vsel %vm510_vm5, %v1072_v22, %v536_v39  ;;  %v653_v42 = vsub.f32 %v1364_v32, %v1383_v43  ;;  %v257_v22 = vmul.f32 0.6931472, %v823_v23  ;;  %v1403_v27 = vpop.eup %824  ;;  %v446_v3 = vpack.c.bf16 %v434_v45, %v433_v50  ;;  %v399_v45 = vld [vmem:[#allocation9 + $0x20] sm:$0xff]  ;;  %v400_v23 = vld [vmem:[#allocation9 + $0x28] sm:$0xff] }
  0x7f   :  { %750 = vmatprep.subr.bf16.mxu0 %v996_v0  ;;  %v827_v60 = vpop.eup %826  ;;  %840 = vpow2.f32 %v189_v38  ;;  %v269_v39 = vmul.f32 %v1338_v12, %v268_v36  ;;  %v112_v50 = vmax.f32 %v1116_v8, 0.0  ;;  %vm271_vm8 = vcmp.lt.f32.partialorder %v270_v34, 0.0004427343 }
  0x80   :  { %v263_v61 = vsel %vm1398_vm6, %v260_v10, %v257_v22  ;;  %842 = vpow2.f32 %v191_v58  ;;  %v829_v55 = vpop.eup %828  ;;  %v538_v53 = vmul.f32 0.6931472, %v827_v60  ;;  %vm511_vm10 = vcmp.lt.f32.partialorder %v1064_v13, -25.0 }
  0x81   :  { %v367_v40 = vadd.f32 %v263_v61, %v111_v20  ;;  %844 = vpow2.f32 %v193_v62  ;;  %v728_v20 = vadd.f32 -1.0, %v1306_v17  ;;  %vm512_vm11 = vcmp.lt.f32.partialorder %v1066_v14, -25.0 }
  0x82   :  { %v540_v49 = vmul.f32 0.6931472, %v829_v55  ;;  %v1424_v16 = vmul.f32 0.5, %v727_v57  ;;  %v594_v44 = vmul.f32 %v1255_v33, %v1255_v33  ;;  %v1431_v54 = vsel %vm511_vm10, %v1064_v13, %v538_v53 }
  0x83   :  { %v831_v35 = vpop.eup %830  ;;  %v1419_v12 = vsel %vm127_vm7, %v1113_v63, %v367_v40  ;;  %v1428_v29 = vmul.f32 0.5, %v728_v20  ;;  %v595_v22 = vmul.f32 %v1203_v41, %v1203_v41  ;;  %v578_v13 = vmul.f32 %v1253_v51, %v1253_v51 }
  0x84   :  { %v833_v10 = vpop.eup %832  ;;  %v266_v15 = vmul.f32 0.6931472, %v831_v35  ;;  %v415_v37 = vmul.f32 %v399_v45, %v1419_v12  ;;  %v1441_v36 = vsel %vm512_vm11, %v1066_v14, %v540_v49  ;;  %v579_v41 = vmul.f32 %v1209_v9, %v1209_v9 }
  0x85   :  { %v835_v58 = vpop.eup %834  ;;  %v610_v40 = vadd.f32 %v594_v44, %v578_v13  ;;  %v596_v53 = vmul.f32 %v1218_v24, %v1218_v24  ;;  %vm513_vm12 = vcmp.lt.f32.partialorder %v1058_v5, -25.0  ;;  %vm514_vm13 = vcmp.lt.f32.partialorder %v1060_v7, -25.0 }
  0x86   :  { %751 = vmatpush3.bf16.xpose.msra.mxu0 %v446_v3  ;;  %v272_v48 = vsel %vm271_vm8, %v269_v39, %v266_v15  ;;  %v431_v33 = vadd.f32 %v415_v37, %v1435_v19  ;;  %v837_v60 = vpop.eup %836  ;;  %v1447_v3 = vld [vmem:[#allocation6 + $0x28] sm:$0xff]  ;;  %v611_v51 = vadd.f32 %v595_v22, %v579_v41  ;;  %v542_v20 = vmul.f32 0.6931472, %v835_v58 }
  0x87   :  { %752 = vmatprep.subr.bf16.mxu0 %v996_v0  ;;  %v368_v17 = vadd.f32 %v272_v48, %v112_v50  ;;  %v544_v48 = vmul.f32 0.6931472, %v837_v60  ;;  %v580_v37 = vmul.f32 %v1224_v25, %v1224_v25  ;;  %vm515_vm14 = vcmp.lt.f32.partialorder %v1052_v1, -25.0 }
  0x88   :  { %v546_v24 = vmul.f32 0.6931472, %v1403_v27  ;;  %v548_v49 = vmul.f32 0.6931472, %v833_v10  ;;  %vm516_vm15 = vcmp.lt.f32.partialorder %v1054_v2, -25.0  ;;  %v1480_v25 = vsel %vm513_vm12, %v1058_v5, %v542_v20 }
  0x89   :  { %v1438_v38 = vsel %vm128_vm9, %v1116_v8, %v368_v17  ;;  %v1483_v58 = vsel %vm514_vm13, %v1060_v7, %v544_v48  ;;  %v612_v27 = vadd.f32 %v596_v53, %v580_v37  ;;  %v731_v13 = vadd.f32 -1.0, %v611_v51 }
  0x8a   :  { %v416_v62 = vmul.f32 %v400_v23, %v1438_v38  ;;  %v839_v34 = vpop.eup %838  ;;  %v729_v23 = vadd.f32 -1.0, %v1259_v28  ;;  %v1490_v28 = vsel %vm516_vm15, %v1054_v2, %v548_v49  ;;  %vm997_vm0 = vmmov 0  }
  0x8b   :  { %v219_v35 = vadd.f32 1.0, %v839_v34  ;;  %v222_v44 = vmul.f32 -0.5, %v839_v34  ;;  %v732_v60 = vadd.f32 -1.0, %v612_v27  ;;  %v225_v5 = vand.u32 2147483647, %v839_v34  ;;  %758 = vmatprep.mubr.msk.bf16.mxu0 %vm997_vm0, %v996_v0 }
  0x8c   :  { %v432_v14 = vadd.f32 %v416_v62, %v1447_v3  ;;  %v1456_v39 = vpop.eup %840  ;;  %v1487_v62 = vsel %vm515_vm14, %v1052_v1, %v546_v24  ;;  %v1492_v41 = vmul.f32 0.5, %v729_v23  ;;  %v1498_v1 = vmul.f32 0.5, %v731_v13  ;;  %v76_v23 = vld [vmem:[#allocation6 + $0x8] sm:$0xff] }
  0x8d   :  { %v1458_v57 = vpop.eup %842  ;;  %v228_v45 = vadd.f32 1.0, %v1456_v39  ;;  %846 = vlog2.f32 %v219_v35  ;;  %v231_v22 = vmul.f32 -0.5, %v1456_v39  ;;  %v107_v48 = vmax.f32 %v1359_v4, 0.0 }
  0x8e   :  { %v445_v50 = vpack.c.bf16 %v432_v14, %v431_v33  ;;  %v1461_v9 = vpop.eup %844  ;;  %v237_v15 = vadd.f32 1.0, %v1458_v57  ;;  %v240_v10 = vmul.f32 -0.5, %v1458_v57  ;;  %v730_v33 = vadd.f32 -1.0, %v610_v40 }
  0x8f   :  { %848 = vlog2.f32 %v228_v45  ;;  %v246_v17 = vadd.f32 1.0, %v1461_v9  ;;  %v223_v14 = vadd.f32 1.0, %v222_v44  ;;  %v232_v35 = vadd.f32 1.0, %v231_v22 }
  0x90   :  { %753 = vmatpush3.bf16.xpose.msra.mxu0 %v445_v50  ;;  %850 = vlog2.f32 %v237_v15  ;;  %v1494_v50 = vmul.f32 0.5, %v730_v33  ;;  %v249_v7 = vmul.f32 -0.5, %v1461_v9  ;;  %v1500_v45 = vmul.f32 0.5, %v732_v60 }
  0x91   :  { %754 = vmatprep.subr.bf16.mxu0 %v996_v0  ;;  %852 = vlog2.f32 %v246_v17  ;;  %v234_v40 = vand.u32 2147483647, %v1456_v39  ;;  %v241_v53 = vadd.f32 1.0, %v240_v10  ;;  %v224_v37 = vmul.f32 %v839_v34, %v223_v14 }
  0x92   :  { %v243_v24 = vand.u32 2147483647, %v1458_v57  ;;  %v108_v17 = vmax.f32 %v1361_v30, 0.0  ;;  %vm1514_vm1 = vcmp.lt.f32.partialorder %v225_v5, 0.0004427343  ;;  %v233_v44 = vmul.f32 %v1456_v39, %v232_v35 }
  0x93   :  { %v250_v22 = vadd.f32 1.0, %v249_v7  ;;  %854 = vlog2.f32 %v1344_v6  ;;  %vm1520_vm2 = vcmp.lt.f32.partialorder %v234_v40, 0.0004427343  ;;  %v252_v34 = vand.u32 2147483647, %v1461_v9 }
  0x94   :  { %v109_v13 = vmax.f32 %v1369_v52, 0.0  ;;  %v110_v60 = vmax.f32 %v1371_v11, 0.0  ;;  %v242_v5 = vmul.f32 %v1458_v57, %v241_v53  ;;  %vm123_vm3 = vcmp.ne.f32.partialorder %v1359_v4, %v1359_v4 }
  0x95   :  { %vm124_vm4 = vcmp.ne.f32.partialorder %v1361_v30, %v1361_v30  ;;  %vm1534_vm5 = vcmp.lt.f32.partialorder %v243_v24, 0.0004427343  ;;  %v251_v57 = vmul.f32 %v1461_v9, %v250_v22  ;;  %856 = vlog2.f32 %v1419_v12  ;;  %v397_v22 = vld [vmem:[#allocation9 + $0x10] sm:$0xff] }
  0x96   :  { %vm125_vm6 = vcmp.ne.f32.partialorder %v1369_v52, %v1369_v52  ;;  %vm1544_vm7 = vcmp.lt.f32.partialorder %v252_v34, 0.0004427343  ;;  %858 = vlog2.f32 %v1438_v38  ;;  %vm126_vm8 = vcmp.ne.f32.partialorder %v1371_v11, %v1371_v11 }
  0x97   :  { %v571_v55 = vmul.f32 %v1344_v6, %v1344_v6  ;;  %v570_v21 = vmul.f32 %v1438_v38, %v1438_v38  ;;  %vm507_vm9 = vcmp.lt.f32.partialorder %v1075_v26, -25.0  ;;  %vm505_vm10 = vcmp.lt.f32.partialorder %v1113_v63, -25.0 }
  0x98   :  { %vm506_vm11 = vcmp.lt.f32.partialorder %v1116_v8, -25.0  ;;  %vm501_vm12 = vcmp.lt.f32.partialorder %v1359_v4, -25.0  ;;  %vm502_vm13 = vcmp.lt.f32.partialorder %v1361_v30, -25.0  ;;  %vm508_vm14 = vcmp.lt.f32.partialorder %v1078_v31, -25.0 }
  0x99   :  { %vm503_vm15 = vcmp.lt.f32.partialorder %v1369_v52, -25.0  ;;  %vm504_vm0 = vcmp.lt.f32.partialorder %v1371_v11, -25.0  ;;  %v1687_v26 = vsub.f32 %v1373_v56, %v1391_v47  ;;  %v1691_v32 = vsub.f32 %v1494_v50, %v1483_v58 }
  0x9a   :  { %v847_v49 = vpop.eup %846  ;;  %v1692_v56 = vsub.f32 %v1498_v1, %v1487_v62 }
  0x9b   :  { %v221_v10 = vmul.f32 0.6931472, %v847_v49 }
  0x9c   :  { %v849_v27 = vpop.eup %848 }
  0x9d   :  { %v230_v14 = vmul.f32 0.6931472, %v849_v27  ;;  %v851_v15 = vpop.eup %850  ;;  %v227_v39 = vsel %vm1514_vm1, %v224_v37, %v221_v10  ;;  %v75_v27 = vld [vmem:[#allocation6] sm:$0xff]  ;;  %v77_v10 = vld [vmem:[#allocation6 + $0x10] sm:$0xff] }
  0x9e   :  { %v239_v40 = vmul.f32 0.6931472, %v851_v15  ;;  %v363_v53 = vadd.f32 %v227_v39, %v107_v48  ;;  %v853_v49 = vpop.eup %852  ;;  %v398_v39 = vld [vmem:[#allocation9 + $0x18] sm:$0xff] }
  0x9f   :  { %v236_v7 = vsel %vm1520_vm2, %v233_v44, %v230_v14  ;;  %v248_v9 = vmul.f32 0.6931472, %v853_v49  ;;  %v581_v14 = vmul.f32 %v75_v27, %v75_v27  ;;  %v78_v49 = vld [vmem:[#allocation6 + $0x18] sm:$0xff] }
  0xa0   :  { %v364_v24 = vadd.f32 %v236_v7, %v108_v17  ;;  %v245_v15 = vsel %vm1534_vm5, %v242_v5, %v239_v40  ;;  %v379_v48 = vsel %vm123_vm3, %v1359_v4, %v363_v53  ;;  %v582_v7 = vmul.f32 %v76_v23, %v76_v23  ;;  %v855_v2 = vpop.eup %854 }
  0xa1   :  { %v365_v44 = vadd.f32 %v245_v15, %v109_v13  ;;  %860 = vlog2.f32 %v379_v48  ;;  %v254_v33 = vsel %vm1544_vm7, %v251_v57, %v248_v9  ;;  %v565_v34 = vmul.f32 %v379_v48, %v379_v48  ;;  %v395_v15 = vld [vmem:[#allocation9] sm:$0xff]  ;;  %v396_v9 = vld [vmem:[#allocation9 + $0x8] sm:$0xff] }
  0xa2   :  { %v380_v17 = vsel %vm124_vm4, %v1361_v30, %v364_v24  ;;  %v366_v5 = vadd.f32 %v254_v33, %v110_v60  ;;  %v587_v40 = vmul.f32 %v1356_v59, %v1356_v59  ;;  %v585_v53 = vmul.f32 %v1435_v19, %v1435_v19 }
  0xa3   :  { %862 = vlog2.f32 %v380_v17  ;;  %v381_v13 = vsel %vm125_vm6, %v1369_v52, %v365_v44  ;;  %v566_v35 = vmul.f32 %v380_v17, %v380_v17  ;;  %v583_v24 = vmul.f32 %v77_v10, %v77_v10 }
  0xa4   :  { %v413_v57 = vmul.f32 %v397_v22, %v381_v13  ;;  %864 = vlog2.f32 %v381_v13  ;;  %v382_v60 = vsel %vm126_vm8, %v1371_v11, %v366_v5  ;;  %v567_v37 = vmul.f32 %v381_v13, %v381_v13 }
  0xa5   :  { %866 = vlog2.f32 %v1347_v18  ;;  %v414_v44 = vmul.f32 %v398_v39, %v382_v60  ;;  %v597_v59 = vadd.f32 %v581_v14, %v565_v34  ;;  %v569_v19 = vmul.f32 %v1419_v12, %v1419_v12 }
  0xa6   :  { %v429_v33 = vadd.f32 %v413_v57, %v77_v10  ;;  %868 = vlog2.f32 %v382_v60  ;;  %v568_v22 = vmul.f32 %v382_v60, %v382_v60  ;;  %v584_v20 = vmul.f32 %v78_v49, %v78_v49 }
  0xa7   :  { %v598_v51 = vadd.f32 %v582_v7, %v566_v35  ;;  %v430_v61 = vadd.f32 %v414_v44, %v78_v49  ;;  %v411_v5 = vmul.f32 %v395_v15, %v379_v48  ;;  %v412_v13 = vmul.f32 %v396_v9, %v380_v17  ;;  %v857_v48 = vpop.eup %856 }
  0xa8   :  { %v586_v10 = vmul.f32 %v1447_v3, %v1447_v3  ;;  %v599_v34 = vadd.f32 %v583_v24, %v567_v37  ;;  %v572_v12 = vmul.f32 %v1347_v18, %v1347_v18  ;;  %v588_v14 = vmul.f32 %v1366_v46, %v1366_v46  ;;  %v859_v60 = vpop.eup %858 }
  0xa9   :  { %v444_v39 = vpack.c.bf16 %v430_v61, %v429_v33  ;;  %v717_v35 = vadd.f32 -1.0, %v597_v59  ;;  %v601_v7 = vadd.f32 %v585_v53, %v569_v19  ;;  %v600_v6 = vadd.f32 %v584_v20, %v568_v22 }
  0xaa   :  { %v718_v49 = vadd.f32 -1.0, %v598_v51  ;;  %v603_v17 = vadd.f32 %v587_v40, %v571_v55  ;;  %v427_v57 = vadd.f32 %v411_v5, %v75_v27  ;;  %v428_v38 = vadd.f32 %v412_v13, %v76_v23 }
  0xab   :  { %755 = vmatpush3.bf16.xpose.msra.mxu0 %v444_v39  ;;  %v602_v18 = vadd.f32 %v586_v10, %v570_v21  ;;  %v719_v3 = vadd.f32 -1.0, %v599_v34  ;;  %v604_v61 = vadd.f32 %v588_v14, %v572_v12  ;;  %v629_v55 = vmul.f32 0.5, %v717_v35 }
  0xac   :  { %756 = vmatprep.subr.bf16.mxu0 %v996_v0  ;;  %v721_v20 = vadd.f32 -1.0, %v601_v7  ;;  %v720_v23 = vadd.f32 -1.0, %v600_v6  ;;  %v630_v40 = vmul.f32 0.5, %v718_v49  ;;  %v723_v53 = vadd.f32 -1.0, %v603_v17  ;;  %v457_v7 = vld [vmem:[#allocation2] sm:$0xff] }
  0xad   :  { %v526_v37 = vmul.f32 0.6931472, %v857_v48  ;;  %v443_v24 = vpack.c.bf16 %v428_v38, %v427_v57  ;;  %v722_v0 = vadd.f32 -1.0, %v602_v18  ;;  %v631_v44 = vmul.f32 0.5, %v719_v3  ;;  %v870_v3 = vld [vmem:[#allocation8 + $0x30] sm:$0xff] }
  0xae   :  { %v861_v46 = vpop.eup %860  ;;  %v528_v59 = vmul.f32 0.6931472, %v859_v60  ;;  %v633_v10 = vmul.f32 0.5, %v721_v20  ;;  %v632_v34 = vmul.f32 0.5, %v720_v23  ;;  %v530_v14 = vmul.f32 0.6931472, %v855_v2 }
  0xaf   :  { %v518_v27 = vmul.f32 0.6931472, %v861_v46  ;;  %v634_v6 = vmul.f32 0.5, %v722_v0  ;;  %v635_v57 = vmul.f32 0.5, %v723_v53  ;;  %v871_v20 = vld [vmem:[#allocation8 + $0x38] sm:$0xff]  ;;  %v1689_v0 = vsub.f32 %v1428_v29, %v1441_v36 }
  0xb0   :  { %v863_v51 = vpop.eup %862  ;;  %v554_v2 = vsel %vm506_vm11, %v1116_v8, %v528_v59  ;;  %v555_v46 = vsel %vm507_vm9, %v870_v3, %v530_v14 }
  0xb1   :  { %v520_v21 = vmul.f32 0.6931472, %v863_v51  ;;  %v865_v15 = vpop.eup %864  ;;  %v549_v9 = vsel %vm501_vm12, %v1359_v4, %v518_v27  ;;  %v553_v4 = vsel %vm505_vm10, %v1113_v63, %v526_v37  ;;  %v651_v8 = vsub.f32 %v635_v57, %v555_v46 }
  0xb2   :  { %v867_v33 = vpop.eup %866  ;;  %v522_v19 = vmul.f32 0.6931472, %v865_v15  ;;  %v645_v5 = vsub.f32 %v629_v55, %v549_v9  ;;  %v649_v38 = vsub.f32 %v633_v10, %v553_v4  ;;  %v650_v55 = vsub.f32 %v634_v6, %v554_v2 }
  0xb3   :  { %v550_v22 = vsel %vm502_vm13, %v1361_v30, %v520_v21  ;;  %v869_v13 = vpop.eup %868  ;;  %757 = vmatpush3.bf16.xpose.msra.mxu0 %v443_v24  ;;  %v724_v30 = vadd.f32 -1.0, %v604_v61  ;;  %v532_v17 = vmul.f32 0.6931472, %v867_v33  ;;  %v1688_v15 = vsub.f32 %v1424_v16, %v1431_v54 }
  0xb4   :  { %v646_v12 = vsub.f32 %v630_v40, %v550_v22  ;;  %v524_v39 = vmul.f32 0.6931472, %v869_v13  ;;  %v551_v35 = vsel %vm503_vm15, %v1369_v52, %v522_v19  ;;  %v458_v52 = vpack.c.bf16 %v457_v7, %v457_v7 }
  0xb5   :  { %v647_v49 = vsub.f32 %v631_v44, %v551_v35  ;;  %v636_v61 = vmul.f32 0.5, %v724_v30  ;;  %v556_v27 = vsel %vm508_vm14, %v871_v20, %v532_v17  ;;  %v1690_v44 = vsub.f32 %v1492_v41, %v1480_v25 }
  0xb6   :  { %v661_v48 = vadd.f32 %v646_v12, %v645_v5  ;;  %v552_v63 = vsel %vm504_vm0, %v1371_v11, %v524_v39 }
  0xb7   :  { %v648_v60 = vsub.f32 %v632_v34, %v552_v63  ;;  %v652_v40 = vsub.f32 %v636_v61, %v556_v27 }
  0xb8   :  { %v662_v18 = vadd.f32 %v661_v48, %v647_v49 }
  0xba   :  { %v663_v51 = vadd.f32 %v662_v18, %v648_v60  ;;  %759 = vmatmul.mubr.bf16.vlgmr.msra.gmra.mxu0 %v458_v52 }
  0xbc   :  { %v664_v23 = vadd.f32 %v663_v51, %v649_v38 }
  0xbe   :  { %v665_v11 = vadd.f32 %v664_v23, %v650_v55 }
  0xc0   :  { %v666_v53 = vadd.f32 %v665_v11, %v651_v8 }
  0xc2   :  { %v667_v37 = vadd.f32 %v666_v53, %v652_v40 }
  0xc4   :  { %v668_v21 = vadd.f32 %v667_v37, %v653_v42  ;;  %v1693_v42 = vsub.f32 %v1500_v45, %v1490_v28 }
  0xc6   :  { %v669_v24 = vadd.f32 %v668_v21, %v1687_v26 }
  0xc8   :  { %v670_v31 = vadd.f32 %v669_v24, %v1688_v15 }
  0xca   :  { %v671_v9 = vadd.f32 %v670_v31, %v1689_v0 }
  0xcc   :  { %v672_v33 = vadd.f32 %v671_v9, %v1690_v44 }
  0xce   :  { %v673_v43 = vadd.f32 %v672_v33, %v1691_v32 }
  0xd0   :  { %v674_v47 = vadd.f32 %v673_v43, %v1692_v56 }
  0xd2   :  { %v675_v16 = vadd.f32 %v674_v47, %v1693_v42 }
  0xd4   :  { %676 = vadd.xlane.f32.xlu0 %v675_v16 }
 0x15d   :  { %v677_v54 = vpop.xlane.xlu0 %676 }
 0x15e   :  { %v678_v29 = vrot.slane %v677_v54, 4 }
 0x160   :  { %v679_v36 = vadd.f32 %v678_v29, %v677_v54 }
 0x162   :  { %v680_v59 = vrot.slane %v679_v36, 2 }
 0x164   :  { %v681_v19 = vadd.f32 %v680_v59, %v679_v36 }
 0x166   :  { %v682_v25 = vrot.slane %v681_v19, 1 }
 0x168   :  { %v683_v41 = vadd.f32 %v682_v25, %v681_v19 }
 0x16a   :  { %762 = vpush %v683_v41 }
 0x17a   :  { %v493_v58 = vpop.f32.mrf.mxu0 }
 0x17b   :  { %500 = vst [vmem:[#allocation11] sm:$0xff] %v493_v58 }
 0x17c   :  { %v760_v50 = vpop.f32.mrf.mxu0 }
 0x17e   :  { %v496_v62 = vpop.f32.mrf.mxu0 }
 0x17f   :  { %963 = shalt.err (!%p960_p10)
}
 0x180   :  { %696 = dma.vmem_to_hbm [thread:$0]  %s694_s3, 128, %s1653_s4, [#allocation4]   ;;  %v761_v28 = vpop.f32.mrf.mxu0 }
 0x181   :  { %s999_s17 = smov [#allocation12]  }
 0x19b   :  { %s763_s16 = spop %762 }
 0x19c   :  { %686 = sst [smem:[#allocation12]] %s763_s16 }
 0x19d   :  { %704 = dma.smem_to_hbm %s999_s17, 16, %s1654_s5, [#allocation5]  }
 0x19e   :  { %986 = dma.done.wait [#allocation4], 128  }
 0x19f   :  { %987 = vsyncadd [#allocation4], 4294967168 }
 0x1a0   :  { %988 = dma.done.wait [#allocation5], 16  }
 0x1a1   :  { %989 = vsyncadd [#allocation5], 4294967280 }
 0x1a2   :  { %711 = sfence }
 0x1a3   :  { %712 = vsyncpa [#allocation3], 1 }
 0x1a4   :  { %713 = vsyncpa [#allocation7], 1 }
 0x1a5   :  { %714 = vsyncpa [#allocation10], 1 }
 0x1a6   :  { %715 = vsyncpa [#allocation4], 1 }
 0x1a7   :  { %716 = vsyncpa [#allocation5], 1 }

</bundles_post_ra>
